<compile_context>
chip_gen: v5e
topology: v5e:2x2
jax: 0.10.0
libtpu: 0.0.40
codegen_flags: <defaults>
</compile_context>

<pallas_src>
import jax
import jax.numpy as jnp
from jax.experimental import pallas as pl
from jax.experimental.pallas import tpu as pltpu


def _chomp_copy_kernel(x_ref, o_ref):
    # Pure tile copy: both refs are (row_tile, seq_tile) VMEM blocks.
    o_ref[...] = x_ref[...]


def _round_up(a: int, b: int) -> int:
    return ((a + b - 1) // b) * b


def chomp1d(x: jax.Array, chomp_size: int, *, row_tile: int = 512,
            seq_tile: int = 1024) -> jax.Array:
    """Pallas implementation of Chomp1d.forward.

    Args:
        x: [batch, features, seq_len]
        chomp_size: number of trailing time steps to remove (> 0).
        row_tile / seq_tile: tiling caps (multiples of 32 / 128).
    Returns:
        [batch, features, seq_len - chomp_size], contiguous.
    """
    assert chomp_size > 0, "chomp_size must be positive (PyTorch uses [:-chomp_size])"
    b, f, l = x.shape
    l_out = l - chomp_size
    assert l_out > 0, "chomp_size must be smaller than seq_len"

    rows = b * f
    x2 = x.reshape(rows, l)  # contiguous -> free reshape

    # Sublane packing per dtype: f32 -> 8, bf16/f16 -> 16, int8/fp8 -> 32.
    itemsize = jnp.dtype(x.dtype).itemsize
    sublane = {4: 8, 2: 16, 1: 32}.get(itemsize, 8)

    # row_tile=512, seq_tile=1024 are multiples of 32 / 128, so the min with a
    # rounded-up shape stays aligned.
    rt = min(row_tile, _round_up(rows, sublane))
    tl = min(seq_tile, _round_up(l_out, 128))

    grid = (pl.cdiv(rows, rt), pl.cdiv(l_out, tl))

    out2 = pl.pallas_call(
        _chomp_copy_kernel,
        out_shape=jax.ShapeDtypeStruct((rows, l_out), x.dtype),
        grid_spec=pltpu.PrefetchScalarGridSpec(
            num_scalar_prefetch=0,
            grid=grid,
            # Input uses the SAME block/index_map as the output, so only the
            # kept columns [0, l_out) are ever fetched (ragged tails handled
            # by Pallas boundary clipping on both input and output).
            in_specs=[pl.BlockSpec((rt, tl), lambda i, j: (i, j))],
            out_specs=pl.BlockSpec((rt, tl), lambda i, j: (i, j)),
        ),
        compiler_params=pltpu.CompilerParams(
            # Both axes independent -> shard across both TCs on v7x.
            dimension_semantics=("parallel", "parallel"),
            # Footprint: 2 bufs * (in_tile + out_tile) <= ~8 MiB for the
            # default caps; keep an explicit budget well under v7x's 64 MiB.
            vmem_limit_bytes=32 * 1024 * 1024,
        ),
    )(x2)

    return out2.reshape(b, f, l_out)


if __name__ == "__main__":
    # Small shapes consistent with the module's forward:
    # x: [batch_size, features, seq_len]
    batch, features, seq_len = 2, 4, 16
    chomp_size = 3

    key = jax.random.PRNGKey(0)
    x = jax.random.normal(key, (batch, features, seq_len), dtype=jnp.float32)

    out = chomp1d(x, chomp_size)
    out = jax.block_until_ready(out)

    # Reference check (pure JAX slice, same semantics as the PyTorch module).
    ref = x[:, :, :-chomp_size]
    assert out.shape == (batch, features, seq_len - chomp_size)
    assert out.dtype == x.dtype
    assert jnp.array_equal(out, ref)

    print("KERNEL_OK")
</pallas_src>

<mosaic_0001>
module attributes {stable_mosaic.version = 11 : i64} {
  func.func @_chomp_copy_kernel(%arg0: i32, %arg1: i32, %arg2: memref<8x128xf32, #tpu.memory_space<vmem>>, %arg3: memref<8x128xf32, #tpu.memory_space<vmem>>) attributes {dimension_semantics = [#tpu.dimension_semantics<parallel>, #tpu.dimension_semantics<parallel>], iteration_bounds = array<i64: 1, 1>, scalar_prefetch = 0 : i64, scratch_operands = 0 : i64, tpu.core_type = #tpu.core_type<tc>, window_params = [{transform_indices = @transform_0, window_bounds = array<i64: 8, 128>}, {transform_indices = @transform_1, window_bounds = array<i64: 8, 128>}]} {
    %c0 = arith.constant 0 : index
    %c0_0 = arith.constant 0 : index
    %0 = vector.load %arg2[%c0, %c0_0] : memref<8x128xf32, #tpu.memory_space<vmem>>, vector<8x128xf32>
    %c0_1 = arith.constant 0 : index
    %c0_2 = arith.constant 0 : index
    %1 = vector.load %arg3[%c0_1, %c0_2] : memref<8x128xf32, #tpu.memory_space<vmem>>, vector<8x128xf32>
    tpu.vector_store %arg3[%c0_1, %c0_2], %0 {strides = array<i32>} : memref<8x128xf32, #tpu.memory_space<vmem>>, vector<8x128xf32>,
    return
  }
  func.func @transform_0(%arg0: i32, %arg1: i32) -> (i32, i32) {
    %c0_i32 = arith.constant 0 : i32
    return %arg0, %arg1 : i32, i32
  }
  func.func @transform_1(%arg0: i32, %arg1: i32) -> (i32, i32) {
    %c0_i32 = arith.constant 0 : i32
    return %arg0, %arg1 : i32, i32
  }
}

</mosaic_0001>

<bundles_post_ra>
// kernel: tpu_custom_call.1
= control target key start
LH: loop header
LB: loop body
LE: loop exit
PB: predicated region body
PF: predicated region fallthrough
CT: control target
= control target key end

     0   :  { %6 = vsyncpa [#allocation3], 0  ;;  %s114_s0 = inlined_call_operand.hbm [shape: f32[8,16], index: 0, kind: input, shape index: {}]   ;;  %s115_s1 = inlined_call_operand.hbm [shape: f32[8,13], index: 1, kind: output, shape index: {}]  }
   0x1   :  { %7 = vsyncpa [#allocation4], 0  ;;  %s13_s8 = sshll.u32 %s114_s0, 4  ;;  %s96_s9 = smov [#allocation2]   ;;  %s14_s8 = int_to_ptr.hbm [resolvable:$true] %s13_s8 }
   0x2   :  { %s15_s10 = sshll.u32 %s96_s9, 4  ;;  %s16_s10 = int_to_ptr.vmem [resolvable:$true] %s15_s10 }
   0x3   :  { %18 = dma.hbm_to_vmem [thread:$0]  %s14_s8, 128, %s16_s10, [#allocation3]  }
   0x4   :  { %92 = dma.done.wait [#allocation3], 128  }
   0x5   :  { %93 = vsyncadd [#allocation3], 4294967168  ;;  %s97_s11 = smov [#allocation5]   ;;  %s32_s15 = sshll.u32 %s115_s1, 4  ;;  %v23_v0 = vld [vmem:[#allocation2] sm:$0xff]  ;;  %s33_s15 = int_to_ptr.hbm [resolvable:$true] %s32_s15 }
   0x6   :  { %s30_s12 = sshll.u32 %s97_s11, 4  ;;  %24 = vst [vmem:[#allocation5] sm:$0xff] %v23_v0  ;;  %s31_s12 = int_to_ptr.vmem [resolvable:$true] %s30_s12 }
   0x7   :  { %35 = dma.vmem_to_hbm [thread:$0]  %s31_s12, 128, %s33_s15, [#allocation4]  }
   0x8   :  { %94 = dma.done.wait [#allocation4], 128  }
   0x9   :  { %95 = vsyncadd [#allocation4], 4294967168 }
   0xa   :  { %40 = vsyncpa [#allocation3], 1 }
   0xb   :  { %41 = vsyncpa [#allocation4], 1 }

</bundles_post_ra>
